<compile_context>
chip_gen: v7x
topology: tpu7x:2x2x1
jax: 0.10.0
libtpu: 0.0.40
codegen_flags: <defaults>
</compile_context>

<pallas_src>
import functools

import jax
import jax.numpy as jnp
from jax.experimental import pallas as pl
from jax.experimental.pallas import tpu as pltpu

INPUT_DIM = 1
OUTPUT_DIM = 1
HIDDEN_DIM = 32
NUM_LAYERS = 4          # Linear layers: 1->32, 32->32, 32->32, 32->1


def _round_up(x, m):
    return ((x + m - 1) // m) * m


def _tpu_generation():
    """Best-effort TPU generation (5 / 6 / 7); defaults to 6."""
    try:
        kind = jax.devices()[0].device_kind.lower()
    except Exception:
        return 6
    for tok, gen in (("v7", 7), ("7x", 7), ("v6", 6), ("6e", 6),
                     ("v5", 5), ("5e", 5), ("5p", 5)):
        if tok in kind:
            return gen
    return 6


def _tile_cap(gen):
    # v5e: single vector-store slot -> keep [32,TM] intermediates smaller.
    return 4096 if gen <= 5 else 16384


def _vmem_limit_bytes(gen):
    # v7x: 64 MiB physical VMEM per TC; v5e/v6e: 128 MiB.
    return (48 << 20) if gen >= 7 else (100 << 20)


def _pick_tm(n, gen):
    """Lane-aligned batch tile, generation-aware.

    Single-TC parts (v5e/v6e): fewest grid steps possible (extra steps only
    add the ~0.35us/step overhead).  v7x: guarantee >=2 steps on the
    "parallel" axis so both TensorCores are fed, unless the batch is tiny.
    """
    n128 = _round_up(max(n, 1), 128)
    cap = _tile_cap(gen)
    if gen >= 7 and n128 > 256:
        half = _round_up((n128 + 1) // 2, 128)   # split into >=2 steps
        return min(cap, half)
    return min(cap, n128)


def _mlp_kernel(x_ref,
                w0_ref, b0_ref,
                w1_ref, b1_ref,
                w2_ref, b2_ref,
                w3_ref, b3_ref,
                o_ref):
    """One batch tile: full 4-layer MLP forward, batch on lanes."""
    x = x_ref[...]                                              # (1, TM)
    # layer 0: Linear(1, H) as an outer-product broadcast (VPU) + ReLU
    h = jnp.maximum(w0_ref[...] * x + b0_ref[...], 0.0)        # (H, TM)
    # layers 1, 2: Linear(H, H) as W @ h on the MXU + ReLU
    h = jnp.maximum(
        jnp.dot(w1_ref[...], h, preferred_element_type=jnp.float32)
        + b1_ref[...], 0.0)                                     # (H, TM)
    h = jnp.maximum(
        jnp.dot(w2_ref[...], h, preferred_element_type=jnp.float32)
        + b2_ref[...], 0.0)                                     # (H, TM)
    # layer 3: Linear(H, 1) also on the MXU (w3 is a [1, H] row), no ReLU
    out = (jnp.dot(w3_ref[...], h, preferred_element_type=jnp.float32)
           + b3_ref[...])                                       # (1, TM)
    o_ref[...] = out.astype(o_ref.dtype)


def init_mlp_params(key,
                    input_dim=INPUT_DIM,
                    output_dim=OUTPUT_DIM,
                    hidden_dim=HIDDEN_DIM,
                    num_layers=NUM_LAYERS):
    """kaiming_normal (fan_in, relu gain) weights, zero biases.

    Returns list of (W, b) with W in PyTorch [out, in] layout.
    """
    dims = [input_dim] + [hidden_dim] * (num_layers - 1) + [output_dim]
    params = []
    for i in range(num_layers):
        fan_in, fan_out = dims[i], dims[i + 1]
        key, sub = jax.random.split(key)
        std = (2.0 / fan_in) ** 0.5
        w = std * jax.random.normal(sub, (fan_out, fan_in), dtype=jnp.float32)
        b = jnp.zeros((fan_out,), dtype=jnp.float32)
        params.append((w, b))
    return params


def _rep_spec(arr):
    """Whole (small) array resident in VMEM every grid step."""
    nd = arr.ndim
    return pl.BlockSpec(arr.shape, lambda i, _nd=nd: (0,) * _nd)


@functools.partial(jax.jit, static_argnames=("tm", "vmem_limit"))
def _mlp_forward_jit(x, w0, b0c, w1, b1c, w2, b2c, w3r, b3c, *,
                     tm, vmem_limit):
    n = x.shape[0]
    n_pad = _round_up(n, tm)

    # [N, 1] -> [1, N] is a free reshape; pad only n_pad - n scalars.
    x_row = jnp.reshape(x.astype(jnp.float32), (1, n))
    x_row = jnp.pad(x_row, ((0, 0), (0, n_pad - n)))

    grid = (n_pad // tm,)
    out_row = pl.pallas_call(
        _mlp_kernel,
        out_shape=jax.ShapeDtypeStruct((1, n_pad), jnp.float32),
        grid=grid,
        in_specs=[
            pl.BlockSpec((1, tm), lambda i: (0, i)),     # x tile (lane-dense)
            _rep_spec(w0), _rep_spec(b0c),
            _rep_spec(w1), _rep_spec(b1c),
            _rep_spec(w2), _rep_spec(b2c),
            _rep_spec(w3r), _rep_spec(b3c),
        ],
        out_specs=pl.BlockSpec((1, tm), lambda i: (0, i)),
        compiler_params=pltpu.CompilerParams(
            dimension_semantics=("parallel",),
            vmem_limit_bytes=vmem_limit),
    )(x_row, w0, b0c, w1, b1c, w2, b2c, w3r, b3c)

    return out_row[0, :n].reshape(n, OUTPUT_DIM)


def mlp_forward(x, params):
    """x: [N, input_dim=1] float32 -> [N, output_dim=1] float32."""
    n, in_dim = x.shape
    assert in_dim == INPUT_DIM and len(params) == NUM_LAYERS
    (w0, b0), (w1, b1), (w2, b2), (w3, b3) = params

    gen = _tpu_generation()
    tm = _pick_tm(n, gen)
    return _mlp_forward_jit(
        x,
        w0.reshape(HIDDEN_DIM, 1), b0.reshape(HIDDEN_DIM, 1),
        w1, b1.reshape(HIDDEN_DIM, 1),
        w2, b2.reshape(HIDDEN_DIM, 1),
        w3.reshape(1, HIDDEN_DIM), b3.reshape(1, 1),
        tm=tm, vmem_limit=_vmem_limit_bytes(gen))


def mlp_reference(x, params):
    h = x.astype(jnp.float32)
    for li, (w, b) in enumerate(params):
        h = h @ w.T + b
        if li < len(params) - 1:
            h = jnp.maximum(h, 0.0)
    return h


if __name__ == "__main__":
    key = jax.random.PRNGKey(0)
    pkey, xkey, x2key = jax.random.split(key, 3)

    params = init_mlp_params(pkey)

    # small example: batch of 16 scalars (input_dim=1)
    x = jax.random.normal(xkey, (16, INPUT_DIM), dtype=jnp.float32)
    out = jax.block_until_ready(mlp_forward(x, params))
    ref = mlp_reference(x, params)
    assert out.shape == (16, OUTPUT_DIM), out.shape
    assert jnp.allclose(out, ref, atol=1e-4, rtol=1e-4)

    # non-multiple-of-tile batch: exercises padding (+ multi-step grid on v7x)
    x2 = jax.random.normal(x2key, (300, INPUT_DIM), dtype=jnp.float32)
    out2 = jax.block_until_ready(mlp_forward(x2, params))
    ref2 = mlp_reference(x2, params)
    assert out2.shape == (300, OUTPUT_DIM), out2.shape
    assert jnp.allclose(out2, ref2, atol=1e-4, rtol=1e-4)

    print("KERNEL_OK")
</pallas_src>

<mosaic_0001>
module attributes {stable_mosaic.version = 11 : i64} {
  func.func @_mlp_kernel(%arg0: i32, %arg1: memref<1x128xf32, #tpu.memory_space<vmem>>, %arg2: memref<32x1xf32, #tpu.memory_space<vmem>>, %arg3: memref<32x1xf32, #tpu.memory_space<vmem>>, %arg4: memref<32x32xf32, #tpu.memory_space<vmem>>, %arg5: memref<32x1xf32, #tpu.memory_space<vmem>>, %arg6: memref<32x32xf32, #tpu.memory_space<vmem>>, %arg7: memref<32x1xf32, #tpu.memory_space<vmem>>, %arg8: memref<1x32xf32, #tpu.memory_space<vmem>>, %arg9: memref<1x1xf32, #tpu.memory_space<vmem>>, %arg10: memref<1x128xf32, #tpu.memory_space<vmem>>) attributes {dimension_semantics = [#tpu.dimension_semantics<parallel>], iteration_bounds = array<i64: 1>, scalar_prefetch = 0 : i64, scratch_operands = 0 : i64, tpu.core_type = #tpu.core_type<tc>, window_params = [{transform_indices = @transform_0, window_bounds = array<i64: 1, 128>}, {pipeline_mode = #tpu.pipeline_mode<synchronous>, transform_indices = @transform_1, window_bounds = array<i64: 32, 1>}, {pipeline_mode = #tpu.pipeline_mode<synchronous>, transform_indices = @transform_2, window_bounds = array<i64: 32, 1>}, {pipeline_mode = #tpu.pipeline_mode<synchronous>, transform_indices = @transform_3, window_bounds = array<i64: 32, 32>}, {pipeline_mode = #tpu.pipeline_mode<synchronous>, transform_indices = @transform_4, window_bounds = array<i64: 32, 1>}, {pipeline_mode = #tpu.pipeline_mode<synchronous>, transform_indices = @transform_5, window_bounds = array<i64: 32, 32>}, {pipeline_mode = #tpu.pipeline_mode<synchronous>, transform_indices = @transform_6, window_bounds = array<i64: 32, 1>}, {pipeline_mode = #tpu.pipeline_mode<synchronous>, transform_indices = @transform_7, window_bounds = array<i64: 1, 32>}, {pipeline_mode = #tpu.pipeline_mode<synchronous>, transform_indices = @transform_8, window_bounds = array<i64: 1, 1>}, {transform_indices = @transform_9, window_bounds = array<i64: 1, 128>}]} {
    %c0 = arith.constant 0 : index
    %c0_0 = arith.constant 0 : index
    %0 = vector.load %arg1[%c0, %c0_0] : memref<1x128xf32, #tpu.memory_space<vmem>>, vector<1x128xf32>
    %c0_1 = arith.constant 0 : index
    %c0_2 = arith.constant 0 : index
    %1 = vector.load %arg2[%c0_1, %c0_2] : memref<32x1xf32, #tpu.memory_space<vmem>>, vector<32x1xf32>
    %2 = vector.broadcast %1 : vector<32x1xf32> to vector<32x128xf32>
    %3 = vector.broadcast %0 : vector<1x128xf32> to vector<32x128xf32>
    %4 = arith.mulf %2, %3 : vector<32x128xf32>
    %c0_3 = arith.constant 0 : index
    %c0_4 = arith.constant 0 : index
    %5 = vector.load %arg3[%c0_3, %c0_4] : memref<32x1xf32, #tpu.memory_space<vmem>>, vector<32x1xf32>
    %6 = vector.broadcast %5 : vector<32x1xf32> to vector<32x128xf32>
    %7 = arith.addf %4, %6 : vector<32x128xf32>
    %cst = arith.constant 0.000000e+00 : f32
    %8 = vector.broadcast %cst : f32 to vector<32x128xf32>
    %9 = arith.maximumf %7, %8 : vector<32x128xf32>
    %c0_5 = arith.constant 0 : index
    %c0_6 = arith.constant 0 : index
    %10 = vector.load %arg4[%c0_5, %c0_6] : memref<32x32xf32, #tpu.memory_space<vmem>>, vector<32x32xf32>
    %cst_7 = arith.constant dense<0.000000e+00> : vector<32x128xf32>
    %11 = tpu.matmul %10, %9, %cst_7 {dimension_numbers = #tpu.dot_dimension_numbers<[1], [0], [0], [1], [0, 0, 1, 1], [], []>} : vector<32x32xf32>, vector<32x128xf32>, vector<32x128xf32> -> vector<32x128xf32>
    %c0_8 = arith.constant 0 : index
    %c0_9 = arith.constant 0 : index
    %12 = vector.load %arg5[%c0_8, %c0_9] : memref<32x1xf32, #tpu.memory_space<vmem>>, vector<32x1xf32>
    %13 = vector.broadcast %12 : vector<32x1xf32> to vector<32x128xf32>
    %14 = arith.addf %11, %13 : vector<32x128xf32>
    %cst_10 = arith.constant 0.000000e+00 : f32
    %15 = vector.broadcast %cst_10 : f32 to vector<32x128xf32>
    %16 = arith.maximumf %14, %15 : vector<32x128xf32>
    %c0_11 = arith.constant 0 : index
    %c0_12 = arith.constant 0 : index
    %17 = vector.load %arg6[%c0_11, %c0_12] : memref<32x32xf32, #tpu.memory_space<vmem>>, vector<32x32xf32>
    %cst_13 = arith.constant dense<0.000000e+00> : vector<32x128xf32>
    %18 = tpu.matmul %17, %16, %cst_13 {dimension_numbers = #tpu.dot_dimension_numbers<[1], [0], [0], [1], [0, 0, 1, 1], [], []>} : vector<32x32xf32>, vector<32x128xf32>, vector<32x128xf32> -> vector<32x128xf32>
    %c0_14 = arith.constant 0 : index
    %c0_15 = arith.constant 0 : index
    %19 = vector.load %arg7[%c0_14, %c0_15] : memref<32x1xf32, #tpu.memory_space<vmem>>, vector<32x1xf32>
    %20 = vector.broadcast %19 : vector<32x1xf32> to vector<32x128xf32>
    %21 = arith.addf %18, %20 : vector<32x128xf32>
    %cst_16 = arith.constant 0.000000e+00 : f32
    %22 = vector.broadcast %cst_16 : f32 to vector<32x128xf32>
    %23 = arith.maximumf %21, %22 : vector<32x128xf32>
    %c0_17 = arith.constant 0 : index
    %c0_18 = arith.constant 0 : index
    %24 = vector.load %arg8[%c0_17, %c0_18] : memref<1x32xf32, #tpu.memory_space<vmem>>, vector<1x32xf32>
    %cst_19 = arith.constant dense<0.000000e+00> : vector<1x128xf32>
    %25 = tpu.matmul %24, %23, %cst_19 {dimension_numbers = #tpu.dot_dimension_numbers<[1], [0], [0], [1], [0, 0, 1, 1], [], []>} : vector<1x32xf32>, vector<32x128xf32>, vector<1x128xf32> -> vector<1x128xf32>
    %c0_20 = arith.constant 0 : index
    %c0_21 = arith.constant 0 : index
    %26 = vector.load %arg9[%c0_20, %c0_21] : memref<1x1xf32, #tpu.memory_space<vmem>>, vector<1x1xf32>
    %27 = vector.broadcast %26 : vector<1x1xf32> to vector<1x128xf32>
    %28 = arith.addf %25, %27 : vector<1x128xf32>
    %c0_22 = arith.constant 0 : index
    %c0_23 = arith.constant 0 : index
    %29 = vector.load %arg10[%c0_22, %c0_23] : memref<1x128xf32, #tpu.memory_space<vmem>>, vector<1x128xf32>
    tpu.vector_store %arg10[%c0_22, %c0_23], %28 {strides = array<i32>} : memref<1x128xf32, #tpu.memory_space<vmem>>, vector<1x128xf32>,
    return
  }
  func.func @transform_0(%arg0: i32) -> (i32, i32) {
    %c0_i32 = arith.constant 0 : i32
    %c0_i32_0 = arith.constant 0 : i32
    return %c0_i32, %arg0 : i32, i32
  }
  func.func @transform_1(%arg0: i32) -> (i32, i32) {
    %c0_i32 = arith.constant 0 : i32
    %c0_i32_0 = arith.constant 0 : i32
    %c0_i32_1 = arith.constant 0 : i32
    return %c0_i32, %c0_i32_0 : i32, i32
  }
  func.func @transform_2(%arg0: i32) -> (i32, i32) {
    %c0_i32 = arith.constant 0 : i32
    %c0_i32_0 = arith.constant 0 : i32
    %c0_i32_1 = arith.constant 0 : i32
    return %c0_i32, %c0_i32_0 : i32, i32
  }
  func.func @transform_3(%arg0: i32) -> (i32, i32) {
    %c0_i32 = arith.constant 0 : i32
    %c0_i32_0 = arith.constant 0 : i32
    %c0_i32_1 = arith.constant 0 : i32
    return %c0_i32, %c0_i32_0 : i32, i32
  }
  func.func @transform_4(%arg0: i32) -> (i32, i32) {
    %c0_i32 = arith.constant 0 : i32
    %c0_i32_0 = arith.constant 0 : i32
    %c0_i32_1 = arith.constant 0 : i32
    return %c0_i32, %c0_i32_0 : i32, i32
  }
  func.func @transform_5(%arg0: i32) -> (i32, i32) {
    %c0_i32 = arith.constant 0 : i32
    %c0_i32_0 = arith.constant 0 : i32
    %c0_i32_1 = arith.constant 0 : i32
    return %c0_i32, %c0_i32_0 : i32, i32
  }
  func.func @transform_6(%arg0: i32) -> (i32, i32) {
    %c0_i32 = arith.constant 0 : i32
    %c0_i32_0 = arith.constant 0 : i32
    %c0_i32_1 = arith.constant 0 : i32
    return %c0_i32, %c0_i32_0 : i32, i32
  }
  func.func @transform_7(%arg0: i32) -> (i32, i32) {
    %c0_i32 = arith.constant 0 : i32
    %c0_i32_0 = arith.constant 0 : i32
    %c0_i32_1 = arith.constant 0 : i32
    return %c0_i32, %c0_i32_0 : i32, i32
  }
  func.func @transform_8(%arg0: i32) -> (i32, i32) {
    %c0_i32 = arith.constant 0 : i32
    %c0_i32_0 = arith.constant 0 : i32
    %c0_i32_1 = arith.constant 0 : i32
    return %c0_i32, %c0_i32_0 : i32, i32
  }
  func.func @transform_9(%arg0: i32) -> (i32, i32) {
    %c0_i32 = arith.constant 0 : i32
    %c0_i32_0 = arith.constant 0 : i32
    return %c0_i32, %arg0 : i32, i32
  }
}

</mosaic_0001>

<bundles_post_ra>
// kernel: _mlp_forward_jit.1
= control target key start
LH: loop header
LB: loop body
LE: loop exit
PB: predicated region body
PF: predicated region fallthrough
CT: control target
= control target key end

     0   :  { %s1092_s0 = inlined_call_operand.hbm [shape: f32[1,128], index: 0, kind: input, shape index: {}]   ;;  %s1093_s1 = inlined_call_operand.hbm [shape: f32[32,1], index: 1, kind: input, shape index: {}]   ;;  %s1094_s2 = inlined_call_operand.hbm [shape: f32[32,1], index: 2, kind: input, shape index: {}]   ;;  %s1095_s3 = inlined_call_operand.hbm [shape: f32[32,32], index: 3, kind: input, shape index: {}]   ;;  %s1096_s4 = inlined_call_operand.hbm [shape: f32[32,1], index: 4, kind: input, shape index: {}]   ;;  %s1097_s5 = inlined_call_operand.hbm [shape: f32[32,32], index: 5, kind: input, shape index: {}]   ;;  %s1098_s6 = inlined_call_operand.hbm [shape: f32[32,1], index: 6, kind: input, shape index: {}]   ;;  %s1099_s7 = inlined_call_operand.hbm [shape: f32[1,32], index: 7, kind: input, shape index: {}]   ;;  %s1100_s8 = inlined_call_operand.<no memory space> [shape: f32[1,1], index: 8, kind: input, shape index: {}]   ;;  %s1101_s9 = inlined_call_operand.hbm [shape: f32[1,128], index: 9, kind: output, shape index: {}]  }
   0x1   :  { %v14_v0 = vstv %s1100_s8 }
   0x2   :  { %15 = vst [vmem:[#allocation2] sm:$0x1] %v14_v0 }
   0x3   :  { %16 = vsyncpa [#allocation4], 0 }
   0x4   :  { %17 = vsyncpa [#allocation7], 0 }
   0x5   :  { %18 = vsyncpa [#allocation10], 0 }
   0x6   :  { %19 = vsyncpa [#allocation13], 0 }
   0x7   :  { %20 = vsyncpa [#allocation16], 0 }
   0x8   :  { %21 = vsyncpa [#allocation5], 0  ;;  %s889_s11 = smov [#allocation6]   ;;  %s679_s15 = scalar_lea.hbm %s1093_s1, 512 }
   0x9   :  { %s37_s12 = sshll.u32 %s889_s11, 4  ;;  %p680_p0 = scmp.ne.s32.totalorder %s1093_s1, %s679_s15  ;;  %s38_s12 = int_to_ptr.vmem [resolvable:$true] %s37_s12 }
   0xa   :  { %p683_p1 = scmp.lt.u32.totalorder %s679_s15, %s1093_s1 }
   0xc   :  { %p685_p2 = pnand %p683_p1, %p680_p0 }
   0xe   :  { %688 = shalt.err (!%p685_p2)
}
   0xf   :  { %s689_s19 = scalar_lea.vmem %s38_s12, 512  ;;  %p694_p4 = scmp.lt.s32.totalorder %s38_s12, %s38_s12 }
  0x10   :  { %p690_p3 = scmp.ne.s32.totalorder %s38_s12, %s689_s19  ;;  %p695_p5 = scmp.lt.s32.totalorder %s689_s19, %s689_s19 }
  0x12   :  { %p696_p6 = por %p695_p5, %p694_p4 }
  0x14   :  { %p697_p7 = pnand %p696_p6, %p690_p3 }
  0x16   :  { %700 = shalt.err (!%p697_p7)
}
  0x17   :  { %s890_s20 = smov 128   ;;  %s891_s21 = smov 8  }
  0x18   :  { %43 = dma.hbm_to_vmem [thread:$0]  %s1093_s1, 512, %s38_s12, [#allocation7], %s890_s20, %s890_s20, %s891_s21  }
  0x19   :  { %s892_s24 = smov [#allocation9]   ;;  %s893_s26 = smov [#allocation12]  }
  0x1a   :  { %s61_s25 = sshll.u32 %s892_s24, 4  ;;  %s85_s27 = sshll.u32 %s893_s26, 4  ;;  %s62_s25 = int_to_ptr.vmem [resolvable:$true] %s61_s25  ;;  %s86_s27 = int_to_ptr.vmem [resolvable:$true] %s85_s27 }
  0x1b   :  { %s701_s30 = scalar_lea.hbm %s1095_s3, 512 }
  0x1c   :  { %p702_p8 = scmp.ne.s32.totalorder %s1095_s3, %s701_s30  ;;  %p705_p9 = scmp.lt.u32.totalorder %s701_s30, %s1095_s3 }
  0x1e   :  { %p707_p10 = pnand %p705_p9, %p702_p8 }
  0x20   :  { %710 = shalt.err (!%p707_p10)
}
  0x21   :  { %s711_s1 = scalar_lea.vmem %s62_s25, 512  ;;  %p716_p12 = scmp.lt.s32.totalorder %s62_s25, %s62_s25 }
  0x22   :  { %p712_p11 = scmp.ne.s32.totalorder %s62_s25, %s711_s1  ;;  %p717_p13 = scmp.lt.s32.totalorder %s711_s1, %s711_s1 }
  0x24   :  { %p718_p0 = por %p717_p13, %p716_p12 }
  0x26   :  { %p719_p1 = pnand %p718_p0, %p712_p11 }
  0x28   :  { %722 = shalt.err (!%p719_p1)
}
  0x29   :  { %67 = dma.hbm_to_vmem [thread:$0]  %s1095_s3, 512, %s62_s25, [#allocation10], %s890_s20, %s890_s20, %s891_s21  }
  0x2a   :  { %s723_s18 = scalar_lea.hbm %s1097_s5, 512 }
  0x2b   :  { %p724_p2 = scmp.ne.s32.totalorder %s1097_s5, %s723_s18  ;;  %p727_p3 = scmp.lt.u32.totalorder %s723_s18, %s1097_s5 }
  0x2d   :  { %p729_p4 = pnand %p727_p3, %p724_p2 }
  0x2f   :  { %732 = shalt.err (!%p729_p4)
}
  0x30   :  { %s733_s24 = scalar_lea.vmem %s86_s27, 512  ;;  %p738_p6 = scmp.lt.s32.totalorder %s86_s27, %s86_s27 }
  0x31   :  { %p734_p5 = scmp.ne.s32.totalorder %s86_s27, %s733_s24  ;;  %p739_p7 = scmp.lt.s32.totalorder %s733_s24, %s733_s24 }
  0x33   :  { %p740_p8 = por %p739_p7, %p738_p6 }
  0x35   :  { %p741_p9 = pnand %p740_p8, %p734_p5 }
  0x37   :  { %744 = shalt.err (!%p741_p9)
}
  0x38   :  { %91 = dma.hbm_to_vmem [thread:$0]  %s1097_s5, 512, %s86_s27, [#allocation13], %s890_s20, %s890_s20, %s891_s21  }
  0x39   :  { %s894_s26 = smov [#allocation3]   ;;  %s895_s29 = smov [#allocation8]  }
  0x3a   :  { %s28_s28 = sshll.u32 %s894_s26, 4  ;;  %s49_s30 = sshll.u32 %s895_s29, 4  ;;  %s29_s28 = int_to_ptr.vmem [resolvable:$true] %s28_s28  ;;  %s50_s30 = int_to_ptr.vmem [resolvable:$true] %s49_s30 }
  0x3b   :  { %s745_s13 = scalar_lea.hbm %s1092_s0, 16 }
  0x3c   :  { %p746_p10 = scmp.ne.s32.totalorder %s1092_s0, %s745_s13  ;;  %p749_p11 = scmp.lt.u32.totalorder %s745_s13, %s1092_s0 }
  0x3e   :  { %p751_p12 = pnand %p749_p11, %p746_p10 }
  0x40   :  { %754 = shalt.err (!%p751_p12)
}
  0x41   :  { %s755_s5 = scalar_lea.vmem %s29_s28, 16  ;;  %s759_s27 = scalar_lea.vmem %s29_s28, 32 }
  0x42   :  { %p756_p13 = scmp.ne.s32.totalorder %s29_s28, %s755_s5  ;;  %p760_p0 = scmp.lt.s32.totalorder %s29_s28, %s29_s28 }
  0x43   :  { %p761_p1 = scmp.lt.s32.totalorder %s759_s27, %s755_s5 }
  0x45   :  { %p762_p2 = por %p761_p1, %p760_p0 }
  0x47   :  { %p763_p3 = pnand %p762_p2, %p756_p13 }
  0x49   :  { %766 = shalt.err (!%p763_p3)
}
  0x4a   :  { %31 = dma.hbm_to_vmem [thread:$0]  %s1092_s0, 16, %s29_s28, [#allocation4]  }
  0x4b   :  { %s767_s19 = scalar_lea.hbm %s1094_s2, 512 }
  0x4c   :  { %p768_p4 = scmp.ne.s32.totalorder %s1094_s2, %s767_s19  ;;  %p771_p5 = scmp.lt.u32.totalorder %s767_s19, %s1094_s2 }
  0x4e   :  { %p773_p6 = pnand %p771_p5, %p768_p4 }
  0x50   :  { %776 = shalt.err (!%p773_p6)
}
  0x51   :  { %s777_s25 = scalar_lea.vmem %s50_s30, 512  ;;  %p782_p8 = scmp.lt.s32.totalorder %s50_s30, %s50_s30 }
  0x52   :  { %p778_p7 = scmp.ne.s32.totalorder %s50_s30, %s777_s25  ;;  %p783_p9 = scmp.lt.s32.totalorder %s777_s25, %s777_s25 }
  0x54   :  { %p784_p10 = por %p783_p9, %p782_p8 }
  0x56   :  { %p785_p11 = pnand %p784_p10, %p778_p7 }
  0x58   :  { %788 = shalt.err (!%p785_p11)
}
  0x59   :  { %55 = dma.hbm_to_vmem [thread:$0]  %s1094_s2, 512, %s50_s30, [#allocation7], %s890_s20, %s890_s20, %s891_s21  }
  0x5a   :  { %s896_s28 = smov [#allocation11]   ;;  %s897_s10 = smov [#allocation14]  }
  0x5b   :  { %s73_s29 = sshll.u32 %s896_s28, 4  ;;  %s97_s11 = sshll.u32 %s897_s10, 4  ;;  %s74_s29 = int_to_ptr.vmem [resolvable:$true] %s73_s29  ;;  %s98_s11 = int_to_ptr.vmem [resolvable:$true] %s97_s11 }
  0x5c   :  { %s789_s1 = scalar_lea.hbm %s1096_s4, 512 }
  0x5d   :  { %p790_p12 = scmp.ne.s32.totalorder %s1096_s4, %s789_s1  ;;  %p793_p13 = scmp.lt.u32.totalorder %s789_s1, %s1096_s4 }
  0x5f   :  { %p795_p0 = pnand %p793_p13, %p790_p12 }
  0x61   :  { %798 = shalt.err (!%p795_p0)
}
  0x62   :  { %s799_s2 = scalar_lea.vmem %s74_s29, 512  ;;  %p804_p2 = scmp.lt.s32.totalorder %s74_s29, %s74_s29 }
  0x63   :  { %p800_p1 = scmp.ne.s32.totalorder %s74_s29, %s799_s2  ;;  %p805_p3 = scmp.lt.s32.totalorder %s799_s2, %s799_s2 }
  0x65   :  { %p806_p4 = por %p805_p3, %p804_p2 }
  0x67   :  { %p807_p5 = pnand %p806_p4, %p800_p1 }
  0x69   :  { %810 = shalt.err (!%p807_p5)
}
  0x6a   :  { %79 = dma.hbm_to_vmem [thread:$0]  %s1096_s4, 512, %s74_s29, [#allocation10], %s890_s20, %s890_s20, %s891_s21  }
  0x6b   :  { %s811_s8 = scalar_lea.hbm %s1098_s6, 512 }
  0x6c   :  { %p812_p6 = scmp.ne.s32.totalorder %s1098_s6, %s811_s8  ;;  %p815_p7 = scmp.lt.u32.totalorder %s811_s8, %s1098_s6 }
  0x6e   :  { %p817_p8 = pnand %p815_p7, %p812_p6 }
  0x70   :  { %820 = shalt.err (!%p817_p8)
}
  0x71   :  { %s821_s3 = scalar_lea.vmem %s98_s11, 512  ;;  %p826_p10 = scmp.lt.s32.totalorder %s98_s11, %s98_s11 }
  0x72   :  { %p822_p9 = scmp.ne.s32.totalorder %s98_s11, %s821_s3  ;;  %p827_p11 = scmp.lt.s32.totalorder %s821_s3, %s821_s3 }
  0x74   :  { %p828_p12 = por %p827_p11, %p826_p10 }
  0x76   :  { %p829_p13 = pnand %p828_p12, %p822_p9 }
  0x78   :  { %832 = shalt.err (!%p829_p13)
}
  0x79   :  { %103 = dma.hbm_to_vmem [thread:$0]  %s1098_s6, 512, %s98_s11, [#allocation13], %s890_s20, %s890_s20, %s891_s21  }
  0x7a   :  { %s898_s0 = smov [#allocation15]   ;;  %s833_s10 = scalar_lea.hbm %s1099_s7, 16 }
  0x7b   :  { %s110_s26 = sshll.u32 %s898_s0, 4  ;;  %p834_p0 = scmp.ne.s32.totalorder %s1099_s7, %s833_s10  ;;  %s111_s26 = int_to_ptr.vmem [resolvable:$true] %s110_s26 }
  0x7c   :  { %p837_p1 = scmp.lt.u32.totalorder %s833_s10, %s1099_s7 }
  0x7e   :  { %p839_p2 = pnand %p837_p1, %p834_p0 }
  0x80   :  { %842 = shalt.err (!%p839_p2)
}
  0x81   :  { %s843_s15 = scalar_lea.vmem %s111_s26, 16  ;;  %s847_s6 = scalar_lea.vmem %s111_s26, 32 }
  0x82   :  { %p844_p3 = scmp.ne.s32.totalorder %s111_s26, %s843_s15  ;;  %p848_p4 = scmp.lt.s32.totalorder %s111_s26, %s111_s26 }
  0x83   :  { %p849_p5 = scmp.lt.s32.totalorder %s847_s6, %s843_s15 }
  0x85   :  { %p850_p6 = por %p849_p5, %p848_p4 }
  0x87   :  { %p851_p7 = pnand %p850_p6, %p844_p3 }
  0x89   :  { %854 = shalt.err (!%p851_p7)
}
  0x8a   :  { %113 = dma.hbm_to_vmem [thread:$0]  %s1099_s7, 16, %s111_s26, [#allocation16]  }
  0x8b   :  { %877 = dma.done.wait [#allocation4], 16  }
  0x8c   :  { %878 = vsyncadd [#allocation4], 4294967280 }
  0x8d   :  { %879 = dma.done.wait [#allocation7], 1024  }
  0x8e   :  { %880 = vsyncadd [#allocation7], 4294966272 }
  0x8f   :  { %881 = dma.done.wait [#allocation10], 1024  }
  0x90   :  { %882 = vsyncadd [#allocation10], 4294966272 }
  0x91   :  { %883 = dma.done.wait [#allocation13], 1024  }
  0x92   :  { %884 = vsyncadd [#allocation13], 4294966272 }
  0x93   :  { %885 = dma.done.wait [#allocation16], 16  }
  0x94   :  { %886 = vsyncadd [#allocation16], 4294967280  ;;  %v899_v1 = vmov 0   ;;  %v175_v2 = vld [vmem:[#allocation8] sm:$0xff]  ;;  %v176_v4 = vld [vmem:[#allocation8 + $0x8] sm:$0xff]  ;;  %vm235_vm0 = vcmask 261120  }
  0x95   :  { %678 = vset.pattern.permute.xlu1 %v899_v1  ;;  %677 = vset.pattern.permute.xlu0 %v899_v1  ;;  %v141_v3 = vld [vmem:[#allocation6] sm:$0xff]  ;;  %v142_v5 = vld [vmem:[#allocation6 + $0x8] sm:$0xff]  ;;  %v144_v6 = vld [vmem:[#allocation6 + $0x18] sm:$0xff]  ;;  %vm901_vm1 = vmmov 0   ;;  %s903_s7 = smov [#allocation17]  }
  0x96   :  { %181 = vperm.xlu1 %678, %v175_v2   ;;  %147 = vperm.xlu0 %677, %v141_v3   ;;  %v143_v7 = vld [vmem:[#allocation6 + $0x10] sm:$0xff]  ;;  %v178_v8 = vld [vmem:[#allocation8 + $0x18] sm:$0xff]  ;;  %v212_v10 = vld [vmem:[#allocation11 + $0x8] sm:$0xff]  ;;  %s557_s11 = sshll.u32 %s903_s7, 4  ;;  %s558_s11 = int_to_ptr.vmem [resolvable:$true] %s557_s11 }
  0x97   :  { %v177_v9 = vld [vmem:[#allocation8 + $0x10] sm:$0xff]  ;;  %v211_v11 = vld [vmem:[#allocation11] sm:$0xff]  ;;  %v214_v12 = vld [vmem:[#allocation11 + $0x18] sm:$0xff]  ;;  %s855_s5 = scalar_lea.vmem %s558_s11, 16  ;;  %s859_s27 = scalar_lea.vmem %s558_s11, 32 }
  0x98   :  { %v213_v13 = vld [vmem:[#allocation11 + $0x10] sm:$0xff]  ;;  %v207_v14 = vld [vmem:[#allocation9] sm:$0xff]  ;;  %v342_v15 = vld [vmem:[#allocation14 + $0x8] sm:$0xff]  ;;  %p856_p8 = scmp.ne.s32.totalorder %s558_s11, %s855_s5  ;;  %p860_p9 = scmp.lt.s32.totalorder %s558_s11, %s558_s11 }
  0x99   :  { %v341_v16 = vld [vmem:[#allocation14] sm:$0xff]  ;;  %609 = vmatprep.mubr.msk.f32.mxu0 %vm235_vm0, %v207_v14  ;;  %v344_v17 = vld [vmem:[#allocation14 + $0x18] sm:$0xff]  ;;  %v343_v18 = vld [vmem:[#allocation14 + $0x10] sm:$0xff]  ;;  %p861_p10 = scmp.lt.s32.totalorder %s859_s27, %s855_s5 }
  0x9a   :  { %186 = vperm.xlu1 %678, %v176_v4   ;;  %152 = vperm.xlu0 %677, %v142_v5   ;;  %v467_v19 = vld [vmem:[#allocation2] sm:$0x1]  ;;  %v570_v20 = vld [vmem:[#allocation3] ss:$0 sm:$0xff]  ;;  %v208_v43 = vld [vmem:[#allocation9 + $0x8] sm:$0xff]  ;;  %v900_v4 = vmov 0.0|0.0  }
  0x9b   :  { %v209_v44 = vld [vmem:[#allocation9 + $0x10] sm:$0xff]  ;;  %v210_v45 = vld [vmem:[#allocation9 + $0x18] sm:$0xff]  ;;  %v337_v46 = vld [vmem:[#allocation12] sm:$0xff]  ;;  %v902_v5 = vmov 0.0   ;;  %p862_p11 = por %p861_p10, %p860_p9 }
  0x9c   :  { %623 = vmatprep.mubr.msk.f32.mxu1 %vm235_vm0, %v337_v46  ;;  %v338_v1 = vld [vmem:[#allocation12 + $0x8] sm:$0xff]  ;;  %v339_v2 = vld [vmem:[#allocation12 + $0x10] sm:$0xff]  ;;  %v340_v3 = vld [vmem:[#allocation12 + $0x18] sm:$0xff] }
  0x9d   :  { %p863_p12 = pnand %p862_p11, %p856_p8 }
  0x9e   :  { %162 = vperm.xlu1 %678, %v144_v6   ;;  %157 = vperm.xlu0 %677, %v143_v7  }
  0xa2   :  { %196 = vperm.xlu1 %678, %v178_v8   ;;  %191 = vperm.xlu0 %677, %v177_v9  }
  0xa6   :  { %222 = vperm.xlu1 %678, %v212_v10   ;;  %217 = vperm.xlu0 %677, %v211_v11  }
  0xaa   :  { %232 = vperm.xlu1 %678, %v214_v12   ;;  %227 = vperm.xlu0 %677, %v213_v13  }
  0xae   :  { %352 = vperm.xlu1 %678, %v342_v15   ;;  %347 = vperm.xlu0 %677, %v341_v16  }
  0xb2   :  { %362 = vperm.xlu1 %678, %v344_v17   ;;  %357 = vperm.xlu0 %677, %v343_v18  }
  0xb6   :  { %470 = vperm.xlu0 %677, %v467_v19  }
 0x115   :  { %v182_v21 = vpop.permute.xlu1 %181  ;;  %v148_v22 = vpop.permute.xlu0 %147 }
 0x116   :  { %v171_v23 = vmul.f32 %v570_v20, %v148_v22 }
 0x118   :  { %v199_v26 = vadd.f32 %v182_v21, %v171_v23 }
 0x119   :  { %v187_v24 = vpop.permute.xlu1 %186  ;;  %v153_v25 = vpop.permute.xlu0 %152 }
 0x11a   :  { %v172_v27 = vmul.f32 %v570_v20, %v153_v25  ;;  %v203_v31 = vmax.f32 %v199_v26, 0.0  ;;  %v473_v25 = vlaneseq }
 0x11c   :  { %v200_v28 = vadd.f32 %v187_v24, %v172_v27  ;;  %v466_v24 = vld [vmem:[#allocation15] sm:$0x1]  ;;  %v474_v26 = vshrl.u32 %v473_v25, 7 }
 0x11d   :  { %v163_v29 = vpop.permute.xlu1 %162  ;;  %v158_v30 = vpop.permute.xlu0 %157 }
 0x11e   :  { %v204_v32 = vmax.f32 %v200_v28, 0.0  ;;  %v174_v33 = vmul.f32 %v570_v20, %v163_v29  ;;  %v173_v34 = vmul.f32 %v570_v20, %v158_v30  ;;  %v475_v27 = vsub.s32 0, %v474_v26 }
 0x120   :  { %v640_v35 = vpack.c.bf16 %v204_v32, %v203_v31 }
 0x121   :  { %v197_v36 = vpop.permute.xlu1 %196  ;;  %v192_v37 = vpop.permute.xlu0 %191 }
 0x122   :  { %v202_v38 = vadd.f32 %v197_v36, %v174_v33  ;;  %v201_v39 = vadd.f32 %v192_v37, %v173_v34  ;;  %641 = vmatprep.subr.bf16.mxu0 %v640_v35 }
 0x123   :  { %643 = vmatpush3.bf16.msra.mxu0 %v640_v35 }
 0x124   :  { %v206_v40 = vmax.f32 %v202_v38, 0.0  ;;  %v205_v41 = vmax.f32 %v201_v39, 0.0 }
 0x125   :  { %v223_v47 = vpop.permute.xlu1 %222  ;;  %v218_v48 = vpop.permute.xlu0 %217 }
 0x126   :  { %v644_v42 = vpack.c.bf16 %v206_v40, %v205_v41 }
 0x128   :  { %645 = vmatprep.subr.bf16.mxu0 %v644_v42 }
 0x129   :  { %647 = vmatpush3.bf16.msra.mxu0 %v644_v42  ;;  %v233_v54 = vpop.permute.xlu1 %232  ;;  %v228_v57 = vpop.permute.xlu0 %227 }
 0x12a   :  { %656 = vmatprep.subr.bf16.mxu0 %v900_v4 }
 0x12c   :  { %610 = vmatmul.mubr.msk.f32.vlgmr.msra.gmra.mrb[0].mxu0 %vm235_vm0, %v208_v43 }
 0x12d   :  { %612 = vmatprep.mubr.msk.f32.mxu0 %vm235_vm0, %v209_v44  ;;  %v353_v6 = vpop.permute.xlu1 %352  ;;  %v348_v7 = vpop.permute.xlu0 %347 }
 0x130   :  { %613 = vmatmul.mubr.msk.f32.gmra.mrb[2].mxu0 %vm235_vm0, %v210_v45 }
 0x131   :  { %637 = vmatprep.mubr.msk.f32.mxu0 %vm901_vm1, %v902_v5  ;;  %v363_v13 = vpop.permute.xlu1 %362  ;;  %v358_v16 = vpop.permute.xlu0 %357 }
 0x135   :  { %v471_v28 = vpop.permute.xlu0 %470 }
 0x136   :  { %v476_v29 = vrot.slane %v471_v28, %v475_v27 }
 0x1ff   :  { %v611_v49 = vpop.f32.mrb[0].mxu0 }
 0x200   :  { %v320_v50 = vadd.f32 %v611_v49, %v223_v47  ;;  %v314_v51 = vpop.f32.mrb[1].mxu0 }
 0x201   :  { %v315_v52 = vadd.f32 %v314_v51, %v218_v48 }
 0x202   :  { %v334_v53 = vmax.f32 %v320_v50, 0.0 }
 0x203   :  { %v333_v55 = vmax.f32 %v315_v52, 0.0  ;;  %v614_v56 = vpop.f32.mrb[2].mxu0 }
 0x204   :  { %v330_v58 = vadd.f32 %v614_v56, %v233_v54  ;;  %v324_v59 = vpop.f32.mrb[3].mxu0 }
 0x205   :  { %v325_v60 = vadd.f32 %v324_v59, %v228_v57  ;;  %v648_v61 = vpack.c.bf16 %v334_v53, %v333_v55 }
 0x206   :  { %v336_v62 = vmax.f32 %v330_v58, 0.0 }
 0x207   :  { %v335_v63 = vmax.f32 %v325_v60, 0.0  ;;  %649 = vmatprep.subr.bf16.mxu1 %v648_v61 }
 0x208   :  { %651 = vmatpush3.bf16.msra.mxu1 %v648_v61 }
 0x209   :  { %v652_v0 = vpack.c.bf16 %v336_v62, %v335_v63 }
 0x20b   :  { %653 = vmatprep.subr.bf16.mxu1 %v652_v0 }
 0x20c   :  { %655 = vmatpush3.bf16.msra.mxu1 %v652_v0 }
 0x20f   :  { %624 = vmatmul.mubr.msk.f32.vlgmr.msra.gmra.mrb[0].mxu1 %vm235_vm0, %v338_v1 }
 0x210   :  { %626 = vmatprep.mubr.msk.f32.mxu1 %vm235_vm0, %v339_v2 }
 0x213   :  { %627 = vmatmul.mubr.msk.f32.gmra.mrb[2].mxu1 %vm235_vm0, %v340_v3 }
 0x2e2   :  { %v625_v8 = vpop.f32.mrb[0].mxu1 }
 0x2e3   :  { %v449_v9 = vadd.f32 %v625_v8, %v353_v6  ;;  %v443_v10 = vpop.f32.mrb[1].mxu1 }
 0x2e4   :  { %v444_v11 = vadd.f32 %v443_v10, %v348_v7 }
 0x2e5   :  { %v463_v12 = vmax.f32 %v449_v9, 0.0 }
 0x2e6   :  { %v462_v14 = vmax.f32 %v444_v11, 0.0  ;;  %v628_v15 = vpop.f32.mrb[2].mxu1 }
 0x2e7   :  { %v459_v17 = vadd.f32 %v628_v15, %v363_v13  ;;  %v453_v18 = vpop.f32.mrb[3].mxu1 }
 0x2e8   :  { %v657_v19 = vpack.c.bf16 %v463_v12, %v462_v14  ;;  %v454_v20 = vadd.f32 %v453_v18, %v358_v16 }
 0x2e9   :  { %v465_v21 = vmax.f32 %v459_v17, 0.0 }
 0x2ea   :  { %v464_v22 = vmax.f32 %v454_v20, 0.0  ;;  %658 = vmatpush3.bf16.msra.mxu0 %v657_v19 }
 0x2eb   :  { %659 = vmatprep.subr.bf16.mxu0 %v900_v4 }
 0x2ec   :  { %v660_v23 = vpack.c.bf16 %v465_v21, %v464_v22 }
 0x2ee   :  { %661 = vmatpush3.bf16.msra.mxu0 %v660_v23 }
 0x2f1   :  { %638 = vmatmul.mubr.msk.f32.vlgmr.msra.gmra.mrb[4].mxu0 %vm235_vm0, %v466_v24 }
 0x3c4   :  { %v546_v30 = vpop.f32.mrb[4].mxu0 }
 0x3c5   :  { %v547_v31 = vadd.f32 %v546_v30, %v476_v29  ;;  %v639_v32 = vpop.f32.mrb[5].mxu0 }
 0x3c7   :  { %550 = vst [vmem:[#allocation17] sm:$0x1] %v547_v31 }
 0x3c8   :  { %866 = shalt.err (!%p863_p12)
}
 0x3c9   :  { %s867_s16 = scalar_lea.hbm %s1101_s9, 16 }
 0x3ca   :  { %p868_p13 = scmp.ne.s32.totalorder %s1101_s9, %s867_s16  ;;  %p871_p0 = scmp.lt.u32.totalorder %s867_s16, %s1101_s9 }
 0x3cc   :  { %p873_p1 = pnand %p871_p0, %p868_p13 }
 0x3ce   :  { %876 = shalt.err (!%p873_p1)
}
 0x3cf   :  { %560 = dma.vmem_to_hbm [thread:$0]  %s558_s11, 16, %s1101_s9, [#allocation5]  }
 0x3d0   :  { %887 = dma.done.wait [#allocation5], 16  }
 0x3d1   :  { %888 = vsyncadd [#allocation5], 4294967280 }
 0x3d2   :  { %564 = vsyncpa [#allocation4], 1 }
 0x3d3   :  { %565 = vsyncpa [#allocation7], 1 }
 0x3d4   :  { %566 = vsyncpa [#allocation10], 1 }
 0x3d5   :  { %567 = vsyncpa [#allocation13], 1 }
 0x3d6   :  { %568 = vsyncpa [#allocation16], 1 }
 0x3d7   :  { %569 = vsyncpa [#allocation5], 1 }

</bundles_post_ra>
